<compile_context>
chip_gen: v5e
topology: v5e:2x2
jax: 0.10.0
libtpu: 0.0.40
codegen_flags: <defaults>
</compile_context>

<pallas_src>
import functools
import math

import jax
import jax.numpy as jnp
from jax.experimental import pallas as pl
from jax.experimental.pallas import tpu as pltpu


_DEFAULT_VMEM_BUDGET = 48 * 1024 * 1024  # 3/4 of v7x's 64 MiB per-TC VMEM (safe on all chips)


def _vmem_budget_bytes():
    """Per-TensorCore VMEM budget: 3/4 of physical capacity, conservative fallback."""
    try:
        cap = int(pltpu.get_tpu_info().vmem_capacity_bytes)
        return cap * 3 // 4
    except Exception:
        return _DEFAULT_VMEM_BUDGET


def _compiler_params(dimension_semantics, vmem_budget):
    return pltpu.CompilerParams(
        dimension_semantics=dimension_semantics,
        vmem_limit_bytes=vmem_budget,
    )


def _sublane(dtype):
    """Sublane tile for a dtype: 8 for 4-byte, 16 for 2-byte, 32 for 1-byte."""
    itemsize = jnp.dtype(dtype).itemsize
    return max(8, 32 // max(itemsize, 1))


def _pick_tile(n, target, multiple, prefer_lane=False):
    """Largest divisor of n that is <= target and a multiple of `multiple`.

    With prefer_lane=True, multiples of 128 (lane / MXU-N width) are tried first.
    Falls back to the full dimension (always a legal block shape).
    """
    t = min(n, target)
    if t >= n:
        return n
    if prefer_lane and multiple < 128:
        for cand in range(t - t % 128, 0, -128):
            if n % cand == 0:
                return cand
    for cand in range(t - t % multiple, 0, -multiple):
        if n % cand == 0:
            return cand
    return n


def _spec(block_shape, index_map, buffers=None):
    """BlockSpec, optionally with an explicit pipeline depth (pl.Buffered).

    Falls back to the default (double-buffered) spec if this JAX build does not
    accept BlockSpec(pipeline_mode=...).
    """
    if buffers is None:
        return pl.BlockSpec(block_shape, index_map)
    try:
        return pl.BlockSpec(block_shape, index_map, pipeline_mode=pl.Buffered(buffers))
    except TypeError:
        return pl.BlockSpec(block_shape, index_map)


# ---------------------------------------------------------------------------
# Kernel 1: fused row-tiled QKV projection, scale folded into Q.
# Grid = (num_row_tiles,).
# ---------------------------------------------------------------------------
def _qkv_proj_kernel(x_ref, w_ref, q_ref, k_ref, v_ref, *, scale, d_out):
    x = x_ref[...]                                   # (tr, d_in)
    # One (tr, d_in) @ (d_in, 3*d_out) pass keeps the MXU N dimension full.
    qkv = jnp.dot(x, w_ref[...], preferred_element_type=jnp.float32)
    q_ref[...] = (qkv[:, :d_out] * scale).astype(q_ref.dtype)
    k_ref[...] = qkv[:, d_out:2 * d_out].astype(k_ref.dtype)
    v_ref[...] = qkv[:, 2 * d_out:].astype(v_ref.dtype)


# ---------------------------------------------------------------------------
# Kernel 2: flash-attention style online softmax (non-causal).
# Grid = (num_q_tiles, num_k_tiles); key axis is last and "arbitrary".
# If kv_resident, k_ref/v_ref hold the full (T, d_out) arrays (loaded once) and the
# current (tk, d_out) chunk is sliced with pl.ds; otherwise they are streamed tiles.
# ---------------------------------------------------------------------------
def _flash_attn_kernel(q_ref, k_ref, v_ref, o_ref, m_sc, l_sc, acc_sc, *,
                       kv_tile, kv_resident):
    ki = pl.program_id(1)

    @pl.when(ki == 0)
    def _init():
        m_sc[...] = jnp.full(m_sc.shape, -jnp.inf, dtype=m_sc.dtype)
        l_sc[...] = jnp.zeros(l_sc.shape, dtype=l_sc.dtype)
        acc_sc[...] = jnp.zeros(acc_sc.shape, dtype=acc_sc.dtype)

    q = q_ref[...]                                   # (tq, d_out), already scaled
    if kv_resident:
        off = pl.multiple_of(ki * kv_tile, kv_tile)
        k = k_ref[pl.ds(off, kv_tile), :]            # (tk, d_out) slice of resident K
        v = v_ref[pl.ds(off, kv_tile), :]
    else:
        k = k_ref[...]                               # (tk, d_out) streamed
        v = v_ref[...]

    # scores tile: (tq, tk) = q @ k^T  -> MXU with fp32 accumulation
    s = jax.lax.dot_general(q, k, (((1,), (1,)), ((), ())),
                            preferred_element_type=jnp.float32)

    m_prev = m_sc[...]
    m_new = jnp.maximum(m_prev, jnp.max(s, axis=-1, keepdims=True))
    alpha = jnp.exp(m_prev - m_new)
    p = jnp.exp(s - m_new)                           # fp32 exp (see TODO re: bf16 EUP)

    l_sc[...] = alpha * l_sc[...] + jnp.sum(p, axis=-1, keepdims=True)
    acc_sc[...] = alpha * acc_sc[...] + jnp.dot(
        p.astype(v.dtype), v, preferred_element_type=jnp.float32)
    m_sc[...] = m_new

    @pl.when(ki == pl.num_programs(1) - 1)
    def _finalize():
        inv_l = pl.reciprocal(l_sc[...], approx=True)
        o_ref[...] = (acc_sc[...] * inv_l).astype(o_ref.dtype)


# ---------------------------------------------------------------------------
# Wrapper
# ---------------------------------------------------------------------------
def self_attention_v2(x, wq, wk, wv, *, q_tile=256, k_tile=512, row_tile=256,
                      attn_dtype=jnp.bfloat16):
    """x: (T, d_in); wq/wk/wv: (d_in, d_out) (already transposed from nn.Linear).

    attn_dtype: dtype Q/K/V are materialized in (bf16 by default for MXU throughput;
    all accumulations stay fp32).  Output dtype matches x.
    """
    T, d_in = x.shape
    d_out = wq.shape[1]
    scale = 1.0 / math.sqrt(d_out)           # module scales scores by 1/sqrt(d_out)
    vmem_budget = _vmem_budget_bytes()

    sub_attn = _sublane(attn_dtype)
    sub_row = max(_sublane(x.dtype), sub_attn)

    tr = _pick_tile(T, row_tile, sub_row)
    tq = _pick_tile(T, q_tile, sub_attn)
    tk = _pick_tile(T, k_tile, sub_attn, prefer_lane=True)

    # ---- Fused QKV projection (one MXU pass, scale folded into Q) ----------
    w_qkv = jnp.concatenate([wq, wk, wv], axis=1).astype(x.dtype)   # (d_in, 3*d_out)

    q, k, v = pl.pallas_call(
        functools.partial(_qkv_proj_kernel, scale=scale, d_out=d_out),
        out_shape=(
            jax.ShapeDtypeStruct((T, d_out), attn_dtype),
            jax.ShapeDtypeStruct((T, d_out), attn_dtype),
            jax.ShapeDtypeStruct((T, d_out), attn_dtype),
        ),
        grid_spec=pltpu.PrefetchScalarGridSpec(
            num_scalar_prefetch=0,
            grid=(T // tr,),
            in_specs=[
                pl.BlockSpec((tr, d_in), lambda i: (i, 0)),
                # Constant block index: loaded once, single-buffered to save VMEM.
                _spec((d_in, 3 * d_out), lambda i: (0, 0), buffers=1),
            ],
            out_specs=[
                pl.BlockSpec((tr, d_out), lambda i: (i, 0)),
                pl.BlockSpec((tr, d_out), lambda i: (i, 0)),
                pl.BlockSpec((tr, d_out), lambda i: (i, 0)),
            ],
        ),
        compiler_params=_compiler_params(("parallel",), vmem_budget),
    )(x, w_qkv)

    # ---- Flash attention over (query-tile, key-tile) grid ------------------
    # Hold K and V resident in VMEM across all query tiles when they fit the budget;
    # this cuts K/V HBM traffic from (T/tq)*2*T*d_out bytes down to 2*T*d_out bytes.
    kv_bytes = 2 * T * d_out * jnp.dtype(attn_dtype).itemsize
    kv_resident = kv_bytes <= vmem_budget // 2

    if kv_resident:
        kv_specs = [
            _spec((T, d_out), lambda qi, ki: (0, 0), buffers=1),
            _spec((T, d_out), lambda qi, ki: (0, 0), buffers=1),
        ]
    else:
        # Streaming fallback for very long sequences.
        kv_specs = [
            pl.BlockSpec((tk, d_out), lambda qi, ki: (ki, 0)),
            pl.BlockSpec((tk, d_out), lambda qi, ki: (ki, 0)),
        ]

    out = pl.pallas_call(
        functools.partial(_flash_attn_kernel, kv_tile=tk, kv_resident=kv_resident),
        out_shape=jax.ShapeDtypeStruct((T, d_out), x.dtype),
        grid_spec=pltpu.PrefetchScalarGridSpec(
            num_scalar_prefetch=0,
            grid=(T // tq, T // tk),
            in_specs=[pl.BlockSpec((tq, d_out), lambda qi, ki: (qi, 0))] + kv_specs,
            out_specs=pl.BlockSpec((tq, d_out), lambda qi, ki: (qi, 0)),
            scratch_shapes=[
                pltpu.VMEM((tq, 1), jnp.float32),       # running max
                pltpu.VMEM((tq, 1), jnp.float32),       # running sum
                pltpu.VMEM((tq, d_out), jnp.float32),   # output accumulator
            ],
        ),
        # Keep 'parallel' on the query axis: it shards the grid across v7x's two TCs.
        compiler_params=_compiler_params(("parallel", "arbitrary"), vmem_budget),
    )(q, k, v)
    return out


# ---------------------------------------------------------------------------
# Pure-JAX reference matching the PyTorch forward exactly.
# ---------------------------------------------------------------------------
def _reference(x, wq, wk, wv):
    d_out = wq.shape[1]
    q = x @ wq
    k = x @ wk
    v = x @ wv
    scores = q @ k.T
    w = jax.nn.softmax(scores / math.sqrt(d_out), axis=1)
    return w @ v


if __name__ == "__main__":
    key = jax.random.PRNGKey(0)

    # ---- Test 1: shapes implied by the module (T=8, d_in=32, d_out=32), fp32
    # attention path, single-tile grid -> tight tolerance (validates algorithm). ----
    T, D_IN, D_OUT = 8, 32, 32
    kx, kq, kk, kv, key = jax.random.split(key, 5)
    x = jax.random.normal(kx, (T, D_IN), dtype=jnp.float32)
    wq = jax.random.normal(kq, (D_IN, D_OUT), dtype=jnp.float32) * 0.1
    wk = jax.random.normal(kk, (D_IN, D_OUT), dtype=jnp.float32) * 0.1
    wv = jax.random.normal(kv, (D_IN, D_OUT), dtype=jnp.float32) * 0.1

    out = jax.block_until_ready(self_attention_v2(x, wq, wk, wv, attn_dtype=jnp.float32))
    ref = _reference(x, wq, wk, wv)
    assert out.shape == (T, D_OUT)
    # Loose-ish tolerance: final normalization uses the EUP approximate reciprocal.
    assert jnp.allclose(out, ref, atol=2e-3, rtol=2e-3), "fp32 path mismatch vs reference"

    # ---- Test 2: multi-tile grid (T >> tq, tk) with the default bf16 attention
    # path -> exercises the online-softmax carry across key tiles. ----
    T2, D_IN2, D_OUT2 = 256, 64, 64
    kx, kq, kk, kv, key = jax.random.split(key, 5)
    x2 = jax.random.normal(kx, (T2, D_IN2), dtype=jnp.float32)
    wq2 = jax.random.normal(kq, (D_IN2, D_OUT2), dtype=jnp.float32) * 0.1
    wk2 = jax.random.normal(kk, (D_IN2, D_OUT2), dtype=jnp.float32) * 0.1
    wv2 = jax.random.normal(kv, (D_IN2, D_OUT2), dtype=jnp.float32) * 0.1

    out2 = jax.block_until_ready(
        self_attention_v2(x2, wq2, wk2, wv2, q_tile=64, k_tile=128))
    ref2 = _reference(x2, wq2, wk2, wv2)
    assert out2.shape == (T2, D_OUT2)
    # bf16 Q/K/V operands (fp32 accumulation) -> bf16-level tolerance.
    assert jnp.allclose(out2, ref2, atol=2e-2, rtol=2e-2), "bf16 path mismatch vs reference"

    print("KERNEL_OK")
</pallas_src>

<mosaic_0001>
module attributes {stable_mosaic.version = 11 : i64} {
  func.func @_qkv_proj_kernel(%arg0: i32, %arg1: memref<8x32xf32, #tpu.memory_space<vmem>>, %arg2: memref<32x96xf32, #tpu.memory_space<vmem>>, %arg3: memref<8x32xf32, #tpu.memory_space<vmem>>, %arg4: memref<8x32xf32, #tpu.memory_space<vmem>>, %arg5: memref<8x32xf32, #tpu.memory_space<vmem>>) attributes {dimension_semantics = [#tpu.dimension_semantics<parallel>], iteration_bounds = array<i64: 1>, scalar_prefetch = 0 : i64, scratch_operands = 0 : i64, tpu.core_type = #tpu.core_type<tc>, window_params = [{transform_indices = @transform_0, window_bounds = array<i64: 8, 32>}, {pipeline_mode = #tpu.pipeline_mode<synchronous>, transform_indices = @transform_1, window_bounds = array<i64: 32, 96>}, {transform_indices = @transform_2, window_bounds = array<i64: 8, 32>}, {transform_indices = @transform_3, window_bounds = array<i64: 8, 32>}, {transform_indices = @transform_4, window_bounds = array<i64: 8, 32>}]} {
    %c0 = arith.constant 0 : index
    %c0_0 = arith.constant 0 : index
    %0 = vector.load %arg1[%c0, %c0_0] : memref<8x32xf32, #tpu.memory_space<vmem>>, vector<8x32xf32>
    %c0_1 = arith.constant 0 : index
    %c0_2 = arith.constant 0 : index
    %1 = vector.load %arg2[%c0_1, %c0_2] : memref<32x96xf32, #tpu.memory_space<vmem>>, vector<32x96xf32>
    %cst = arith.constant dense<0.000000e+00> : vector<8x96xf32>
    %2 = tpu.matmul %0, %1, %cst {dimension_numbers = #tpu.dot_dimension_numbers<[1], [0], [0], [1], [0, 0, 1, 1], [], []>} : vector<8x32xf32>, vector<32x96xf32>, vector<8x96xf32> -> vector<8x96xf32>
    %3 = vector.extract_strided_slice %2 {offsets = [0, 0], sizes = [8, 32], strides = [1, 1]} : vector<8x96xf32> to vector<8x32xf32>
    %cst_3 = arith.constant 0.176776692 : f32
    %4 = vector.broadcast %cst_3 : f32 to vector<8x32xf32>
    %5 = arith.mulf %3, %4 : vector<8x32xf32>
    %c0_4 = arith.constant 0 : index
    %c0_5 = arith.constant 0 : index
    %6 = vector.load %arg3[%c0_4, %c0_5] : memref<8x32xf32, #tpu.memory_space<vmem>>, vector<8x32xf32>
    tpu.vector_store %arg3[%c0_4, %c0_5], %5 {strides = array<i32>} : memref<8x32xf32, #tpu.memory_space<vmem>>, vector<8x32xf32>,
    %7 = vector.extract_strided_slice %2 {offsets = [0, 32], sizes = [8, 32], strides = [1, 1]} : vector<8x96xf32> to vector<8x32xf32>
    %c0_6 = arith.constant 0 : index
    %c0_7 = arith.constant 0 : index
    %8 = vector.load %arg4[%c0_6, %c0_7] : memref<8x32xf32, #tpu.memory_space<vmem>>, vector<8x32xf32>
    tpu.vector_store %arg4[%c0_6, %c0_7], %7 {strides = array<i32>} : memref<8x32xf32, #tpu.memory_space<vmem>>, vector<8x32xf32>,
    %9 = vector.extract_strided_slice %2 {offsets = [0, 64], sizes = [8, 32], strides = [1, 1]} : vector<8x96xf32> to vector<8x32xf32>
    %c0_8 = arith.constant 0 : index
    %c0_9 = arith.constant 0 : index
    %10 = vector.load %arg5[%c0_8, %c0_9] : memref<8x32xf32, #tpu.memory_space<vmem>>, vector<8x32xf32>
    tpu.vector_store %arg5[%c0_8, %c0_9], %9 {strides = array<i32>} : memref<8x32xf32, #tpu.memory_space<vmem>>, vector<8x32xf32>,
    return
  }
  func.func @transform_0(%arg0: i32) -> (i32, i32) {
    %c0_i32 = arith.constant 0 : i32
    %c0_i32_0 = arith.constant 0 : i32
    return %arg0, %c0_i32 : i32, i32
  }
  func.func @transform_1(%arg0: i32) -> (i32, i32) {
    %c0_i32 = arith.constant 0 : i32
    %c0_i32_0 = arith.constant 0 : i32
    %c0_i32_1 = arith.constant 0 : i32
    return %c0_i32, %c0_i32_0 : i32, i32
  }
  func.func @transform_2(%arg0: i32) -> (i32, i32) {
    %c0_i32 = arith.constant 0 : i32
    %c0_i32_0 = arith.constant 0 : i32
    return %arg0, %c0_i32 : i32, i32
  }
  func.func @transform_3(%arg0: i32) -> (i32, i32) {
    %c0_i32 = arith.constant 0 : i32
    %c0_i32_0 = arith.constant 0 : i32
    return %arg0, %c0_i32 : i32, i32
  }
  func.func @transform_4(%arg0: i32) -> (i32, i32) {
    %c0_i32 = arith.constant 0 : i32
    %c0_i32_0 = arith.constant 0 : i32
    return %arg0, %c0_i32 : i32, i32
  }
}

</mosaic_0001>

<bundles_post_ra>
// kernel: tpu_custom_call.1
= control target key start
LH: loop header
LB: loop body
LE: loop exit
PB: predicated region body
PF: predicated region fallthrough
CT: control target
= control target key end

     0   :  { %10 = vsyncpa [#allocation3], 0  ;;  %s326_s0 = inlined_call_operand.hbm [shape: f32[8,32], index: 0, kind: input, shape index: {}]   ;;  %s327_s1 = inlined_call_operand.hbm [shape: f32[32,96], index: 1, kind: input, shape index: {}]   ;;  %s328_s2 = inlined_call_operand.hbm [shape: f32[8,32], index: 2, kind: output, shape index: {0}]   ;;  %s329_s3 = inlined_call_operand.hbm [shape: f32[8,32], index: 3, kind: output, shape index: {1}]   ;;  %s330_s4 = inlined_call_operand.hbm [shape: f32[8,32], index: 4, kind: output, shape index: {2}]  }
   0x1   :  { %11 = vsyncpa [#allocation6], 0 }
   0x2   :  { %12 = vsyncpa [#allocation4], 0 }
   0x3   :  { %13 = vsyncpa [#allocation9], 0  ;;  %s19_s17 = sshll.u32 %s326_s0, 4  ;;  %s273_s18 = smov [#allocation2]   ;;  %s20_s17 = int_to_ptr.hbm [resolvable:$true] %s19_s17 }
   0x4   :  { %s21_s19 = sshll.u32 %s273_s18, 4  ;;  %s29_s22 = sshll.u32 %s327_s1, 4  ;;  %s22_s19 = int_to_ptr.vmem [resolvable:$true] %s21_s19  ;;  %s30_s22 = int_to_ptr.hbm [resolvable:$true] %s29_s22 }
   0x5   :  { %24 = dma.hbm_to_vmem [thread:$0]  %s20_s17, 128, %s22_s19, [#allocation3]  }
   0x6   :  { %s274_s23 = smov [#allocation5]   ;;  %s275_s25 = smov 128  }
   0x7   :  { %s31_s24 = sshll.u32 %s274_s23, 4  ;;  %s276_s26 = smov 8   ;;  %s32_s24 = int_to_ptr.vmem [resolvable:$true] %s31_s24 }
   0x8   :  { %37 = dma.hbm_to_vmem [thread:$0]  %s30_s22, 512, %s32_s24, [#allocation6], %s275_s25, %s275_s25, %s276_s26  }
   0x9   :  { %265 = dma.done.wait [#allocation3], 128  }
   0xa   :  { %266 = vsyncadd [#allocation3], 4294967168 }
   0xb   :  { %267 = dma.done.wait [#allocation6], 512  }
   0xc   :  { %268 = vsyncadd [#allocation6], 4294966784  ;;  %v50_v0 = vld [vmem:[#allocation5 + $0x18] sm:$0xff]  ;;  %v49_v1 = vld [vmem:[#allocation5 + $0x10] sm:$0xff]  ;;  %vm51_vm0 = vcmask 261120   ;;  %s277_s0 = smov [#allocation7]  }
   0xd   :  { %67 = vmatpush.msra.mxu0 %v50_v0  ;;  %v48_v2 = vld [vmem:[#allocation5 + $0x8] sm:$0xff]  ;;  %v47_v3 = vld [vmem:[#allocation5] sm:$0xff]  ;;  %v46_v4 = vld [vmem:[#allocation2] sm:$0xff]  ;;  %s91_s1 = sshll.u32 %s277_s0, 4  ;;  %s93_s29 = sshll.u32 %s328_s2, 4  ;;  %s92_s1 = int_to_ptr.vmem [resolvable:$true] %s91_s1  ;;  %s94_s29 = int_to_ptr.hbm [resolvable:$true] %s93_s29 }
   0xe   :  { %s278_s30 = smov 96   ;;  %s279_s5 = smov 64  }
   0xf   :  { %68 = vmatpush.msra.mxu0 %v49_v1  ;;  %s280_s6 = smov [#allocation8]   ;;  %s104_s10 = sshll.u32 %s329_s3, 4  ;;  %s105_s10 = int_to_ptr.hbm [resolvable:$true] %s104_s10 }
  0x10   :  { %s102_s7 = sshll.u32 %s280_s6, 4  ;;  %s281_s2 = smov [#allocation10]   ;;  %s103_s7 = int_to_ptr.vmem [resolvable:$true] %s102_s7 }
  0x11   :  { %69 = vmatpush.msra.mxu0 %v48_v2  ;;  %s113_s11 = sshll.u32 %s281_s2, 4  ;;  %s115_s14 = sshll.u32 %s330_s4, 4  ;;  %s114_s11 = int_to_ptr.vmem [resolvable:$true] %s113_s11  ;;  %s116_s14 = int_to_ptr.hbm [resolvable:$true] %s115_s14 }
  0x13   :  { %70 = vmatpush.msra.mxu0 %v47_v3 }
  0x14   :  { %135 = vmatmul.msk.f32.vlgmr.msra.gmra.mxu0 %vm51_vm0, %v46_v4 }
  0x91   :  { %v72_v5 = vpop.f32.mrf.mxu0 }
  0x92   :  { %v75_v6 = vmul.f32 0.17677669, %v72_v5  ;;  %78 = vrot.lane.b32.xlu0 %v72_v5, %s278_s30 }
  0x94   :  { %76 = vst.msk [vmem:[#allocation7] sm:$0xff] %vm51_vm0, %v75_v6 }
  0x95   :  { %96 = dma.vmem_to_hbm [thread:$0]  %s92_s1, 128, %s94_s29, [#allocation4]  }
  0x9a   :  { %82 = vrot.lane.b32.xlu0 %v72_v5, %s279_s5 }
 0x104   :  { %v79_v7 = vpop.permute.xlu0 %78 }
 0x105   :  { %81 = vst.msk [vmem:[#allocation8] sm:$0xff] %vm51_vm0, %v79_v7 }
 0x106   :  { %107 = dma.vmem_to_hbm [thread:$0]  %s103_s7, 128, %s105_s10, [#allocation9]  }
 0x10c   :  { %v83_v8 = vpop.permute.xlu0 %82 }
 0x10d   :  { %85 = vst.msk [vmem:[#allocation10] sm:$0xff] %vm51_vm0, %v83_v8 }
 0x10e   :  { %118 = dma.vmem_to_hbm [thread:$0]  %s114_s11, 128, %s116_s14, [#allocation9]  }
 0x10f   :  { %269 = dma.done.wait [#allocation4], 128  }
 0x110   :  { %270 = vsyncadd [#allocation4], 4294967168 }
 0x111   :  { %271 = dma.done.wait [#allocation9], 256  }
 0x112   :  { %272 = vsyncadd [#allocation9], 4294967040 }
 0x113   :  { %131 = vsyncpa [#allocation3], 1 }
 0x114   :  { %132 = vsyncpa [#allocation6], 1 }
 0x115   :  { %133 = vsyncpa [#allocation4], 1 }
 0x116   :  { %134 = vsyncpa [#allocation9], 1 }

</bundles_post_ra>
